<compile_context>
chip_gen: v6e
topology: v6e:2x2x1
jax: 0.10.0
libtpu: 0.0.40
codegen_flags: <defaults>
</compile_context>

<pallas_src>
import functools

import jax
import jax.numpy as jnp
from jax.experimental import pallas as pl
from jax.experimental.pallas import tpu as pltpu

LANE = 128


def _round_up(x, m):
    return (x + m - 1) // m * m


def _sep_conv_kernel(x_ref, dw_ref, pw_ref, o_ref, *,
                     KH, KW, TH, Wo, stride, dilation):
    """Fused depthwise + pointwise conv for one (batch, row-tile) grid step.

    x_ref : (1, Hp, Wp, Cin_p)   padded image, channel lane-dense.  Its block
                                 index is constant over the row-tile axis, so
                                 it is DMA'd HBM->VMEM once per batch image.
    dw_ref: (KH*KW, Cin_p)       depthwise weights
    pw_ref: (Cin_p, Cout_p)      pointwise weights
    o_ref : (1, TH, Wo, Cout_p)  output row tile (lane-dense store)
    """
    Cin_p = x_ref.shape[-1]
    Cout_p = o_ref.shape[-1]

    h = pl.program_id(1)
    # First padded-input row touched by this output row tile.
    row0 = pl.multiple_of(h * (TH * stride), TH * stride)

    # Load the (small) depthwise weights once; taps below broadcast rows of it.
    dw = dw_ref[...].astype(jnp.float32)                 # (KH*KW, Cin_p)

    acc = jnp.zeros((TH, Wo, Cin_p), jnp.float32)
    # Depthwise conv: static unrolled loop over the (small) kernel window,
    # each tap is a ref-level load (strided when stride > 1).
    for kh in range(KH):
        for kw in range(KW):
            hs = kh * dilation
            ws = kw * dilation
            if stride == 1:
                patch = x_ref[0, pl.ds(row0 + hs, TH), pl.ds(ws, Wo), :]
            else:
                patch = x_ref[0,
                              pl.ds(row0 + hs, TH, stride=stride),
                              pl.ds(ws, Wo, stride=stride), :]
            # (TH, Wo, Cin_p) * (Cin_p,) broadcast -> lane-dense VPU FMA.
            acc = acc + patch.astype(jnp.float32) * dw[kh * KW + kw]

    # Pointwise 1x1 conv == (TH*Wo, Cin_p) x (Cin_p, Cout_p) MXU matmul.
    y = acc.reshape(TH * Wo, Cin_p)
    out = jnp.dot(y, pw_ref[...].astype(jnp.float32),
                  preferred_element_type=jnp.float32)
    o_ref[0] = out.reshape(TH, Wo, Cout_p).astype(o_ref.dtype)


def separable_conv2d_same(x, dw_w, pw_w, *, stride=1, dilation=1, block_h=8):
    """x: (N, Cin, H, W) NCHW.  dw_w: (Cin, 1, KH, KW).  pw_w: (Cout, Cin, 1, 1)."""
    N, Cin, H, W = x.shape
    Cout = pw_w.shape[0]
    KH, KW = dw_w.shape[2], dw_w.shape[3]

    # fixed_padding semantics (PyTorch helper derives padding from kernel_size[0]).
    k_eff = KH + (KH - 1) * (dilation - 1)
    pad_total = k_eff - 1
    pad_beg = pad_total // 2
    pad_end = pad_total - pad_beg

    Cin_p = _round_up(Cin, LANE)
    Cout_p = _round_up(Cout, LANE)

    # NCHW -> NHWC, then ONE pad for both the "same" spatial halo and the
    # lane-dense channel padding (single HBM copy instead of two).
    x_nhwc = jnp.transpose(x, (0, 2, 3, 1))
    x_pad = jnp.pad(x_nhwc, ((0, 0), (pad_beg, pad_end),
                             (pad_beg, pad_end), (0, Cin_p - Cin)))
    Hp, Wp = x_pad.shape[1], x_pad.shape[2]
    k_eff_w = KW + (KW - 1) * (dilation - 1)
    Ho = (Hp - k_eff) // stride + 1
    Wo = (Wp - k_eff_w) // stride + 1

    # Output row-tile size: largest TH <= block_h dividing Ho.
    TH = max(1, min(block_h, Ho))
    while Ho % TH:
        TH -= 1
    nH = Ho // TH

    # Re-pack weights, zero-padded to the lane width.
    dw = jnp.transpose(dw_w[:, 0, :, :], (1, 2, 0)).reshape(KH * KW, Cin)
    dw = jnp.pad(dw, ((0, 0), (0, Cin_p - Cin)))
    pw = jnp.transpose(pw_w[:, :, 0, 0], (1, 0))                 # (Cin, Cout)
    pw = jnp.pad(pw, ((0, Cin_p - Cin), (0, Cout_p - Cout)))

    kernel = functools.partial(_sep_conv_kernel, KH=KH, KW=KW, TH=TH, Wo=Wo,
                               stride=stride, dilation=dilation)

    out_nhwc = pl.pallas_call(
        kernel,
        out_shape=jax.ShapeDtypeStruct((N, Ho, Wo, Cout_p), x.dtype),
        grid=(N, nH),
        in_specs=[
            # Whole padded image; block index is constant over the h axis, so
            # the HBM->VMEM copy happens once per batch image.
            pl.BlockSpec((1, Hp, Wp, Cin_p), lambda b, h: (b, 0, 0, 0)),
            pl.BlockSpec((KH * KW, Cin_p), lambda b, h: (0, 0)),
            pl.BlockSpec((Cin_p, Cout_p), lambda b, h: (0, 0)),
        ],
        out_specs=pl.BlockSpec((1, TH, Wo, Cout_p), lambda b, h: (b, h, 0, 0)),
        compiler_params=pltpu.CompilerParams(
            dimension_semantics=("parallel", "parallel")),
    )(x_pad, dw, pw)

    # Drop lane padding, NHWC -> NCHW.
    return jnp.transpose(out_nhwc[..., :Cout], (0, 3, 1, 2))


def _reference(x, dw_w, pw_w, *, stride=1, dilation=1):
    """Plain-JAX reference matching the PyTorch module."""
    Cin = x.shape[1]
    KH = dw_w.shape[2]
    k_eff = KH + (KH - 1) * (dilation - 1)
    pad_total = k_eff - 1
    pb, pe = pad_total // 2, pad_total - pad_total // 2
    xp = jnp.pad(x, ((0, 0), (0, 0), (pb, pe), (pb, pe)))
    y = jax.lax.conv_general_dilated(
        xp, dw_w, (stride, stride), 'VALID',
        rhs_dilation=(dilation, dilation), feature_group_count=Cin,
        dimension_numbers=('NCHW', 'OIHW', 'NCHW'))
    z = jax.lax.conv_general_dilated(
        y, pw_w, (1, 1), 'VALID',
        dimension_numbers=('NCHW', 'OIHW', 'NCHW'))
    return z


if __name__ == "__main__":
    # Module config: SeparableConv2d_same(inplanes=4, planes=8, kernel_size=3,
    # stride=1, dilation=1, bias=False)
    inplanes, planes, ksize, stride, dilation = 4, 8, 3, 1, 1
    N, H, W = 2, 16, 16

    key = jax.random.PRNGKey(0)
    kx, kd, kp = jax.random.split(key, 3)

    x = jax.random.normal(kx, (N, inplanes, H, W), dtype=jnp.float32)
    # conv1.weight : (inplanes, 1, k, k)   (depthwise, groups=inplanes)
    dw_w = jax.random.normal(kd, (inplanes, 1, ksize, ksize),
                             dtype=jnp.float32) * (2.0 / (ksize * ksize)) ** 0.5
    # pointwise.weight : (planes, inplanes, 1, 1)
    pw_w = jax.random.normal(kp, (planes, inplanes, 1, 1),
                             dtype=jnp.float32) * (2.0 / inplanes) ** 0.5

    out = separable_conv2d_same(x, dw_w, pw_w, stride=stride, dilation=dilation)
    out = jax.block_until_ready(out)

    ref = _reference(x, dw_w, pw_w, stride=stride, dilation=dilation)
    assert out.shape == (N, planes, H, W), out.shape
    assert jnp.allclose(out, ref, rtol=1e-4, atol=1e-4), \
        float(jnp.max(jnp.abs(out - ref)))

    print("KERNEL_OK")
</pallas_src>

<mosaic_0001>
module attributes {stable_mosaic.version = 11 : i64} {
  func.func @_sep_conv_kernel(%arg0: i32, %arg1: i32, %arg2: memref<1x18x18x128xf32, #tpu.memory_space<vmem>>, %arg3: memref<9x128xf32, #tpu.memory_space<vmem>>, %arg4: memref<128x128xf32, #tpu.memory_space<vmem>>, %arg5: memref<1x8x16x128xf32, #tpu.memory_space<vmem>>) attributes {dimension_semantics = [#tpu.dimension_semantics<parallel>, #tpu.dimension_semantics<parallel>], iteration_bounds = array<i64: 2, 2>, scalar_prefetch = 0 : i64, scratch_operands = 0 : i64, tpu.core_type = #tpu.core_type<tc>, window_params = [{transform_indices = @transform_0, window_bounds = array<i64: 1, 18, 18, 128>}, {pipeline_mode = #tpu.pipeline_mode<synchronous>, transform_indices = @transform_1, window_bounds = array<i64: 9, 128>}, {pipeline_mode = #tpu.pipeline_mode<synchronous>, transform_indices = @transform_2, window_bounds = array<i64: 128, 128>}, {transform_indices = @transform_3, window_bounds = array<i64: 1, 8, 16, 128>}]} {
    %c8_i32 = arith.constant 8 : i32
    %0 = arith.muli %arg1, %c8_i32 : i32
    %1 = tpu.assume_multiple %0, 8 : i32
    %c0 = arith.constant 0 : index
    %c0_0 = arith.constant 0 : index
    %2 = vector.load %arg3[%c0, %c0_0] : memref<9x128xf32, #tpu.memory_space<vmem>>, vector<9x128xf32>
    %cst = arith.constant 0.000000e+00 : f32
    %3 = vector.broadcast %cst : f32 to vector<8x16x128xf32>
    %c0_i32 = arith.constant 0 : i32
    %4 = arith.addi %1, %c0_i32 : i32
    %c0_1 = arith.constant 0 : index
    %5 = arith.index_cast %4 : i32 to index
    %c0_2 = arith.constant 0 : index
    %c0_3 = arith.constant 0 : index
    %6 = vector.load %arg2[%c0_1, %5, %c0_2, %c0_3] : memref<1x18x18x128xf32, #tpu.memory_space<vmem>>, vector<1x8x16x128xf32>
    %7 = vector.shape_cast %6 : vector<1x8x16x128xf32> to vector<8x16x128xf32>
    %8 = vector.extract_strided_slice %2 {offsets = [0, 0], sizes = [1, 128], strides = [1, 1]} : vector<9x128xf32> to vector<1x128xf32>
    %9 = vector.shape_cast %8 : vector<1x128xf32> to vector<128xf32>
    %10 = vector.shape_cast %9 : vector<128xf32> to vector<1x1x128xf32>
    %11 = vector.broadcast %10 : vector<1x1x128xf32> to vector<8x16x128xf32>
    %12 = arith.mulf %7, %11 : vector<8x16x128xf32>
    %13 = arith.addf %3, %12 : vector<8x16x128xf32>
    %c0_i32_4 = arith.constant 0 : i32
    %14 = arith.addi %1, %c0_i32_4 : i32
    %c0_5 = arith.constant 0 : index
    %15 = arith.index_cast %14 : i32 to index
    %c1 = arith.constant 1 : index
    %c0_6 = arith.constant 0 : index
    %16 = vector.load %arg2[%c0_5, %15, %c1, %c0_6] : memref<1x18x18x128xf32, #tpu.memory_space<vmem>>, vector<1x8x16x128xf32>
    %17 = vector.shape_cast %16 : vector<1x8x16x128xf32> to vector<8x16x128xf32>
    %18 = vector.extract_strided_slice %2 {offsets = [1, 0], sizes = [1, 128], strides = [1, 1]} : vector<9x128xf32> to vector<1x128xf32>
    %19 = vector.shape_cast %18 : vector<1x128xf32> to vector<128xf32>
    %20 = vector.shape_cast %19 : vector<128xf32> to vector<1x1x128xf32>
    %21 = vector.broadcast %20 : vector<1x1x128xf32> to vector<8x16x128xf32>
    %22 = arith.mulf %17, %21 : vector<8x16x128xf32>
    %23 = arith.addf %13, %22 : vector<8x16x128xf32>
    %c0_i32_7 = arith.constant 0 : i32
    %24 = arith.addi %1, %c0_i32_7 : i32
    %c0_8 = arith.constant 0 : index
    %25 = arith.index_cast %24 : i32 to index
    %c2 = arith.constant 2 : index
    %c0_9 = arith.constant 0 : index
    %26 = vector.load %arg2[%c0_8, %25, %c2, %c0_9] : memref<1x18x18x128xf32, #tpu.memory_space<vmem>>, vector<1x8x16x128xf32>
    %27 = vector.shape_cast %26 : vector<1x8x16x128xf32> to vector<8x16x128xf32>
    %28 = vector.extract_strided_slice %2 {offsets = [2, 0], sizes = [1, 128], strides = [1, 1]} : vector<9x128xf32> to vector<1x128xf32>
    %29 = vector.shape_cast %28 : vector<1x128xf32> to vector<128xf32>
    %30 = vector.shape_cast %29 : vector<128xf32> to vector<1x1x128xf32>
    %31 = vector.broadcast %30 : vector<1x1x128xf32> to vector<8x16x128xf32>
    %32 = arith.mulf %27, %31 : vector<8x16x128xf32>
    %33 = arith.addf %23, %32 : vector<8x16x128xf32>
    %c1_i32 = arith.constant 1 : i32
    %34 = arith.addi %1, %c1_i32 : i32
    %c0_10 = arith.constant 0 : index
    %35 = arith.index_cast %34 : i32 to index
    %c0_11 = arith.constant 0 : index
    %c0_12 = arith.constant 0 : index
    %36 = vector.load %arg2[%c0_10, %35, %c0_11, %c0_12] : memref<1x18x18x128xf32, #tpu.memory_space<vmem>>, vector<1x8x16x128xf32>
    %37 = vector.shape_cast %36 : vector<1x8x16x128xf32> to vector<8x16x128xf32>
    %38 = vector.extract_strided_slice %2 {offsets = [3, 0], sizes = [1, 128], strides = [1, 1]} : vector<9x128xf32> to vector<1x128xf32>
    %39 = vector.shape_cast %38 : vector<1x128xf32> to vector<128xf32>
    %40 = vector.shape_cast %39 : vector<128xf32> to vector<1x1x128xf32>
    %41 = vector.broadcast %40 : vector<1x1x128xf32> to vector<8x16x128xf32>
    %42 = arith.mulf %37, %41 : vector<8x16x128xf32>
    %43 = arith.addf %33, %42 : vector<8x16x128xf32>
    %c1_i32_13 = arith.constant 1 : i32
    %44 = arith.addi %1, %c1_i32_13 : i32
    %c0_14 = arith.constant 0 : index
    %45 = arith.index_cast %44 : i32 to index
    %c1_15 = arith.constant 1 : index
    %c0_16 = arith.constant 0 : index
    %46 = vector.load %arg2[%c0_14, %45, %c1_15, %c0_16] : memref<1x18x18x128xf32, #tpu.memory_space<vmem>>, vector<1x8x16x128xf32>
    %47 = vector.shape_cast %46 : vector<1x8x16x128xf32> to vector<8x16x128xf32>
    %48 = vector.extract_strided_slice %2 {offsets = [4, 0], sizes = [1, 128], strides = [1, 1]} : vector<9x128xf32> to vector<1x128xf32>
    %49 = vector.shape_cast %48 : vector<1x128xf32> to vector<128xf32>
    %50 = vector.shape_cast %49 : vector<128xf32> to vector<1x1x128xf32>
    %51 = vector.broadcast %50 : vector<1x1x128xf32> to vector<8x16x128xf32>
    %52 = arith.mulf %47, %51 : vector<8x16x128xf32>
    %53 = arith.addf %43, %52 : vector<8x16x128xf32>
    %c1_i32_17 = arith.constant 1 : i32
    %54 = arith.addi %1, %c1_i32_17 : i32
    %c0_18 = arith.constant 0 : index
    %55 = arith.index_cast %54 : i32 to index
    %c2_19 = arith.constant 2 : index
    %c0_20 = arith.constant 0 : index
    %56 = vector.load %arg2[%c0_18, %55, %c2_19, %c0_20] : memref<1x18x18x128xf32, #tpu.memory_space<vmem>>, vector<1x8x16x128xf32>
    %57 = vector.shape_cast %56 : vector<1x8x16x128xf32> to vector<8x16x128xf32>
    %58 = vector.extract_strided_slice %2 {offsets = [5, 0], sizes = [1, 128], strides = [1, 1]} : vector<9x128xf32> to vector<1x128xf32>
    %59 = vector.shape_cast %58 : vector<1x128xf32> to vector<128xf32>
    %60 = vector.shape_cast %59 : vector<128xf32> to vector<1x1x128xf32>
    %61 = vector.broadcast %60 : vector<1x1x128xf32> to vector<8x16x128xf32>
    %62 = arith.mulf %57, %61 : vector<8x16x128xf32>
    %63 = arith.addf %53, %62 : vector<8x16x128xf32>
    %c2_i32 = arith.constant 2 : i32
    %64 = arith.addi %1, %c2_i32 : i32
    %c0_21 = arith.constant 0 : index
    %65 = arith.index_cast %64 : i32 to index
    %c0_22 = arith.constant 0 : index
    %c0_23 = arith.constant 0 : index
    %66 = vector.load %arg2[%c0_21, %65, %c0_22, %c0_23] : memref<1x18x18x128xf32, #tpu.memory_space<vmem>>, vector<1x8x16x128xf32>
    %67 = vector.shape_cast %66 : vector<1x8x16x128xf32> to vector<8x16x128xf32>
    %68 = vector.extract_strided_slice %2 {offsets = [6, 0], sizes = [1, 128], strides = [1, 1]} : vector<9x128xf32> to vector<1x128xf32>
    %69 = vector.shape_cast %68 : vector<1x128xf32> to vector<128xf32>
    %70 = vector.shape_cast %69 : vector<128xf32> to vector<1x1x128xf32>
    %71 = vector.broadcast %70 : vector<1x1x128xf32> to vector<8x16x128xf32>
    %72 = arith.mulf %67, %71 : vector<8x16x128xf32>
    %73 = arith.addf %63, %72 : vector<8x16x128xf32>
    %c2_i32_24 = arith.constant 2 : i32
    %74 = arith.addi %1, %c2_i32_24 : i32
    %c0_25 = arith.constant 0 : index
    %75 = arith.index_cast %74 : i32 to index
    %c1_26 = arith.constant 1 : index
    %c0_27 = arith.constant 0 : index
    %76 = vector.load %arg2[%c0_25, %75, %c1_26, %c0_27] : memref<1x18x18x128xf32, #tpu.memory_space<vmem>>, vector<1x8x16x128xf32>
    %77 = vector.shape_cast %76 : vector<1x8x16x128xf32> to vector<8x16x128xf32>
    %78 = vector.extract_strided_slice %2 {offsets = [7, 0], sizes = [1, 128], strides = [1, 1]} : vector<9x128xf32> to vector<1x128xf32>
    %79 = vector.shape_cast %78 : vector<1x128xf32> to vector<128xf32>
    %80 = vector.shape_cast %79 : vector<128xf32> to vector<1x1x128xf32>
    %81 = vector.broadcast %80 : vector<1x1x128xf32> to vector<8x16x128xf32>
    %82 = arith.mulf %77, %81 : vector<8x16x128xf32>
    %83 = arith.addf %73, %82 : vector<8x16x128xf32>
    %c2_i32_28 = arith.constant 2 : i32
    %84 = arith.addi %1, %c2_i32_28 : i32
    %c0_29 = arith.constant 0 : index
    %85 = arith.index_cast %84 : i32 to index
    %c2_30 = arith.constant 2 : index
    %c0_31 = arith.constant 0 : index
    %86 = vector.load %arg2[%c0_29, %85, %c2_30, %c0_31] : memref<1x18x18x128xf32, #tpu.memory_space<vmem>>, vector<1x8x16x128xf32>
    %87 = vector.shape_cast %86 : vector<1x8x16x128xf32> to vector<8x16x128xf32>
    %88 = vector.extract_strided_slice %2 {offsets = [8, 0], sizes = [1, 128], strides = [1, 1]} : vector<9x128xf32> to vector<1x128xf32>
    %89 = vector.shape_cast %88 : vector<1x128xf32> to vector<128xf32>
    %90 = vector.shape_cast %89 : vector<128xf32> to vector<1x1x128xf32>
    %91 = vector.broadcast %90 : vector<1x1x128xf32> to vector<8x16x128xf32>
    %92 = arith.mulf %87, %91 : vector<8x16x128xf32>
    %93 = arith.addf %83, %92 : vector<8x16x128xf32>
    %94 = vector.shape_cast %93 : vector<8x16x128xf32> to vector<128x128xf32>
    %c0_32 = arith.constant 0 : index
    %c0_33 = arith.constant 0 : index
    %95 = vector.load %arg4[%c0_32, %c0_33] : memref<128x128xf32, #tpu.memory_space<vmem>>, vector<128x128xf32>
    %cst_34 = arith.constant dense<0.000000e+00> : vector<128x128xf32>
    %96 = tpu.matmul %94, %95, %cst_34 {dimension_numbers = #tpu.dot_dimension_numbers<[1], [0], [0], [1], [0, 0, 1, 1], [], []>} : vector<128x128xf32>, vector<128x128xf32>, vector<128x128xf32> -> vector<128x128xf32>
    %97 = vector.shape_cast %96 : vector<128x128xf32> to vector<8x16x128xf32>
    %c0_35 = arith.constant 0 : index
    %c0_36 = arith.constant 0 : index
    %c0_37 = arith.constant 0 : index
    %c0_38 = arith.constant 0 : index
    %98 = vector.load %arg5[%c0_35, %c0_36, %c0_37, %c0_38] : memref<1x8x16x128xf32, #tpu.memory_space<vmem>>, vector<1x8x16x128xf32>
    %99 = vector.shape_cast %98 : vector<1x8x16x128xf32> to vector<8x16x128xf32>
    %100 = vector.shape_cast %97 : vector<8x16x128xf32> to vector<1x8x16x128xf32>
    tpu.vector_store %arg5[%c0_35, %c0_36, %c0_37, %c0_38], %100 {strides = array<i32>} : memref<1x8x16x128xf32, #tpu.memory_space<vmem>>, vector<1x8x16x128xf32>,
    return
  }
  func.func @transform_0(%arg0: i32, %arg1: i32) -> (i32, i32, i32, i32) {
    %c0_i32 = arith.constant 0 : i32
    %c0_i32_0 = arith.constant 0 : i32
    %c0_i32_1 = arith.constant 0 : i32
    %c0_i32_2 = arith.constant 0 : i32
    return %arg0, %c0_i32, %c0_i32_0, %c0_i32_1 : i32, i32, i32, i32
  }
  func.func @transform_1(%arg0: i32, %arg1: i32) -> (i32, i32) {
    %c0_i32 = arith.constant 0 : i32
    %c0_i32_0 = arith.constant 0 : i32
    %c0_i32_1 = arith.constant 0 : i32
    return %c0_i32, %c0_i32_0 : i32, i32
  }
  func.func @transform_2(%arg0: i32, %arg1: i32) -> (i32, i32) {
    %c0_i32 = arith.constant 0 : i32
    %c0_i32_0 = arith.constant 0 : i32
    %c0_i32_1 = arith.constant 0 : i32
    return %c0_i32, %c0_i32_0 : i32, i32
  }
  func.func @transform_3(%arg0: i32, %arg1: i32) -> (i32, i32, i32, i32) {
    %c0_i32 = arith.constant 0 : i32
    %c0_i32_0 = arith.constant 0 : i32
    %c0_i32_1 = arith.constant 0 : i32
    return %arg0, %arg1, %c0_i32, %c0_i32_0 : i32, i32, i32, i32
  }
}

</mosaic_0001>

<bundles_post_ra>
// kernel: tpu_custom_call.1
= control target key start
LH: loop header
LB: loop body
LE: loop exit
PB: predicated region body
PF: predicated region fallthrough
CT: control target
= control target key end

     0   :  { %8 = vsyncpa [#allocation3], 0  ;;  %s2022_s0 = inlined_call_operand.vmem [shape: f32[2,18,18,128], index: 0, kind: input, shape index: {}]   ;;  %s2023_s1 = inlined_call_operand.vmem [shape: f32[9,128], index: 1, kind: input, shape index: {}]   ;;  %s2024_s2 = inlined_call_operand.vmem [shape: f32[128,128], index: 2, kind: input, shape index: {}]   ;;  %s2025_s3 = inlined_call_operand.hbm [shape: f32[2,16,16,128], index: 3, kind: output, shape index: {}]  }
   0x1   :  { %10 = vsyncpa [#allocation3 + $0x1], 0  ;;  %s1372_s12 = smov 0   ;;  %s1374_s13 = smov 0  }
   0x2   :  { %s1376_s14 = smov 0   ;;  %s1378_s15 = smov 0  }
   0x3   :  { %s1380_s16 = smov 0   ;;  %s1382_s17 = smov 0  }
   0x4   :  { %s1384_s18 = smov 0   ;;  %s1386_s19 = smov 0  }
   0x5 LB: > { %s943_s20 = sadd.s32 4294967295, %s1347_s19   ;;  %s944_s21 = sadd.s32 4294967294, %s1347_s19   ;;  %s1347_s19 = sphi %s1386_s19, %s16_s19   ;;  %s1343_s18 = sphi %s1384_s18, %s2037_s18   ;;  %s1339_s17 = sphi %s1382_s17, %s2036_s17   ;;  %s1335_s16 = sphi %s1380_s16, %s2035_s16   ;;  %s1331_s15 = sphi %s1378_s15, %s2034_s15   ;;  %s1327_s14 = sphi %s1376_s14, %s2033_s14   ;;  %s1323_s13 = sphi %s1374_s13, %s2032_s13   ;;  %s1319_s12 = sphi %s1372_s12, %s2031_s12  }
   0x6   : > { %s25_s22 = sadd.s32 1, %s1339_s17  ;;  %s28_s23 = sadd.s32 1, %s1343_s18 }
   0x7   : > { %p26_p0 = scmp.ge.s32.totalorder %s25_s22, 2  ;;  %p115_p1 = scmp.ne.s32.totalorder %s1327_s14, %s1323_s13 }
   0x8   : > { %p116_p2 = scmp.eq.s32.totalorder %s943_s20, 3  ;;  %p121_p5 = scmp.ne.s32.totalorder %s1323_s13, %s1319_s12 }
   0x9   : > { %s2039_s22 = smov (%p26_p0, %s25_s22), 0  ;;  %s2041_s23 = smov (!%p26_p0, %s28_s23), %s1343_s18 }
   0xa   : > { %s101_s24 = ssub.s32 %s1339_s17, %s2039_s22  ;;  %p1423_p3 = por %p116_p2, %p115_p1 }
   0xb   : > { %p30_p4 = scmp.ge.s32.totalorder %s2041_s23, 2  ;;  %p122_p6 = scmp.eq.s32.totalorder %s944_s21, 3 }
   0xc   : > { %p947_p7 = scmp.ge.s32.totalorder %s1347_s19, 1  ;;  %p154_p9 = scmp.lt.s32.totalorder %s1347_s19, 5 }
   0xd   : > { %s2043_s23 = smov (%p30_p4, %s2041_s23), 0  ;;  %p1432_p8 = por %p122_p6, %p121_p5 }
   0xe   : > { %s100_s27 = ssub.s32 %s1343_s18, %s2043_s23  ;;  %s105_s28 = sadd.s32 1, %s1327_s14 }
   0xf   : > { %s102_s29 = sor.u32 %s101_s24, %s100_s27  ;;  %p155_p10 = pnand %p947_p7, %p154_p9 }
  0x10   : > { %p103_p11 = scmp.eq.s32.totalorder %s102_s29, 0 }
  0x11   : > { %158 = sbr.rel (%p155_p10) target bundleno = 324 (0x144), region = 32 }
  0x12   : > { %s1441_s30 = scalar_select %p103_p11, %s1327_s14, %s105_s28  }
  0x16   : > { %v678_v0 = vld [vmem:[%s2024_s2 + $0x78] sm:$0xff]  ;;  %v677_v1 = vld [vmem:[%s2024_s2 + $0x70] sm:$0xff]  ;;  %p178_p12 = scmp.lt.s32.totalorder %s1335_s16, 1  ;;  %v205_v2 = vlaneseq  ;;  %v676_v3 = vld [vmem:[%s2024_s2 + $0x68] sm:$0xff]  ;;  %s951_s11 = smul.u32 192, %s1331_s15 }
  0x17   : > { %1093 = vmatprep.subr.mxu0 %v678_v0  ;;  %1149 = vmatprep.subr.mxu1 %v678_v0  ;;  %v675_v5 = vld [vmem:[%s2024_s2 + $0x60] sm:$0xff]  ;;  %v674_v11 = vld [vmem:[%s2024_s2 + $0x58] sm:$0xff]  ;;  %v673_v16 = vld [vmem:[%s2024_s2 + $0x50] sm:$0xff]  ;;  %s175_s6 = sand.u32 1, %s1323_s13   ;;  %s1056_s9 = sshll.u32 %s1335_s16, 5 }
  0x18   : > { %1094 = vmatpush3.msra.mxu0 %v678_v0  ;;  %1165 = vmatpush3.msra.mxu1 %v678_v0  ;;  %s179_s10 = scalar_select %p178_p12, %s1335_s16, 1  ;;  %v206_v4 = vshrl.u32 %v205_v2, 7  ;;  %v185_v8 = vld [vmem:[%s2023_s1] sm:$0xff]  ;;  %v672_v30 = vld [vmem:[%s2024_s2 + $0x48] sm:$0xff]  ;;  %v670_v45 = vld [vmem:[%s2024_s2 + $0x38] sm:$0xff] }
  0x19   : > { %1095 = vmatprep.subr.mxu0 %v677_v1  ;;  %1150 = vmatprep.subr.mxu1 %v677_v1  ;;  %v671_v31 = vld [vmem:[%s2024_s2 + $0x40] sm:$0xff]  ;;  %v1502_v32 = vld [vmem:[%s2023_s1 + $0x8] ss:$0 sm:$0xff]  ;;  %v669_v62 = vld [vmem:[%s2024_s2 + $0x30] sm:$0xff]  ;;  %s1349_s29 = smov [#allocation2]  }
  0x1a   : > { %1096 = vmatpush3.msra.mxu0 %v677_v1  ;;  %1166 = vmatpush3.msra.mxu1 %v677_v1  ;;  %s1181_s24 = smul.u32 432, %s179_s10  ;;  %v207_v6 = vsub.s32 0, %v206_v4  ;;  %v259_v7 = vsub.s32 1, %v206_v4  ;;  %v311_v9 = vsub.s32 2, %v206_v4  ;;  %v366_v10 = vsub.s32 3, %v206_v4  ;;  %s1259_s4 = sshll.u32 %s1349_s29, 4  ;;  %s1260_s4 = int_to_ptr.vmem [resolvable:$false] %s1259_s4 }
  0x1b   : > { %1097 = vmatprep.subr.mxu0 %v676_v3  ;;  %1151 = vmatprep.subr.mxu1 %v676_v3  ;;  %v418_v14 = vsub.s32 4, %v206_v4  ;;  %v470_v15 = vsub.s32 5, %v206_v4  ;;  %v525_v19 = vsub.s32 6, %v206_v4  ;;  %v577_v25 = vsub.s32 7, %v206_v4  ;;  %s1261_s5 = scalar_lea.vmem %s1260_s4, 4096 }
  0x1c   : > { %1098 = vmatpush3.msra.mxu0 %v676_v3  ;;  %1167 = vmatpush3.msra.mxu1 %v676_v3  ;;  %s182_s7 = scalar_lea.vmem %s2022_s0, %s1181_s24  ;;  %v1467_v12 = vrot.slane %v185_v8, %v207_v6  ;;  %v1469_v13 = vrot.slane %v185_v8, %v259_v7  ;;  %v1476_v17 = vrot.slane %v185_v8, %v311_v9  ;;  %v668_v7 = vld [vmem:[%s2024_s2 + $0x28] sm:$0xff] }
  0x1d   : > { %1099 = vmatprep.subr.mxu0 %v675_v5  ;;  %1152 = vmatprep.subr.mxu1 %v675_v5  ;;  %s1474_s10 = scalar_lea.vmem %s182_s7, %s951_s11  ;;  %v1478_v18 = vrot.slane %v185_v8, %v366_v10  ;;  %v1483_v23 = vrot.slane %v185_v8, %v418_v14  ;;  %v1485_v24 = vrot.slane %v185_v8, %v470_v15  ;;  %v667_v15 = vld [vmem:[%s2024_s2 + $0x20] sm:$0xff]  ;;  %s948_s7 = sshll.u32 %s175_s6, 7 }
  0x1e   : > { %1100 = vmatpush3.msra.mxu0 %v675_v5  ;;  %1168 = vmatpush3.msra.mxu1 %v675_v5  ;;  %v189_v20 = vld [vmem:[%s1474_s10] sm:$0xff]  ;;  %v1491_v29 = vld [vmem:[%s1474_s10 + $0x18] sm:$0xff]  ;;  %v1506_v35 = vrot.slane %v185_v8, %v525_v19  ;;  %v1523_v41 = vrot.slane %v185_v8, %v577_v25  ;;  %v1540_v49 = vld [vmem:[%s1474_s10 + $0x30] sm:$0xff]  ;;  %s1941_s8 = scalar_lea.vmem [#allocation2], %s948_s7 }
  0x1f   : > { %v241_v21 = vld [vmem:[%s1474_s10 + $0x1] sm:$0xff]  ;;  %1101 = vmatprep.subr.mxu0 %v674_v11  ;;  %1153 = vmatprep.subr.mxu1 %v674_v11  ;;  %v209_v26 = vmul.f32 %v1467_v12, %v189_v20  ;;  %v368_v34 = vmul.f32 %v1491_v29, %v1478_v18  ;;  %v1518_v39 = vld [vmem:[%s1474_s10 + $0x19] sm:$0xff]  ;;  %v1543_v50 = vld [vmem:[%s1474_s10 + $0x31] sm:$0xff]  ;;  %s857_s21 = sshll.u32 %s1941_s8, 4  ;;  %s1965_s21 = int_to_ptr.vmem [resolvable:$true] %s857_s21 }
  0x20   : > { %v293_v22 = vld [vmem:[%s1474_s10 + $0x2] sm:$0xff]  ;;  %v261_v27 = vmul.f32 %v1469_v13, %v241_v21  ;;  %1102 = vmatpush3.msra.mxu0 %v674_v11  ;;  %1169 = vmatpush3.msra.mxu1 %v674_v11  ;;  %v1521_v40 = vld [vmem:[%s1474_s10 + $0x1a] sm:$0xff]  ;;  %v420_v47 = vmul.f32 %v1518_v39, %v1483_v23  ;;  %v1546_v51 = vld [vmem:[%s1474_s10 + $0x32] sm:$0xff]  ;;  %v527_v57 = vmul.f32 %v1540_v49, %v1506_v35  ;;  %s1255_s16 = scalar_lea.vmem %s1965_s21, 2048  ;;  %p1262_p2 = scmp.lt.s32.totalorder %s1965_s21, %s1260_s4 }
  0x21   : > { %v313_v28 = vmul.f32 %v1476_v17, %v293_v22  ;;  %1103 = vmatprep.subr.mxu0 %v673_v16  ;;  %1154 = vmatprep.subr.mxu1 %v673_v16  ;;  %v1509_v36 = vld [vmem:[%s1474_s10 + $0x60] sm:$0xff]  ;;  %v1530_v44 = vld [vmem:[%s1474_s10 + $0x78] sm:$0xff]  ;;  %v472_v48 = vmul.f32 %v1521_v40, %v1485_v24  ;;  %v190_v55 = vld [vmem:[%s1474_s10 + $0x8] sm:$0xff]  ;;  %v1557_v58 = vmul.f32 %v1502_v32, %v1546_v51  ;;  %p1256_p13 = scmp.ne.s32.totalorder %s1965_s21, %s1255_s16  ;;  %p1263_p4 = scmp.lt.s32.totalorder %s1261_s5, %s1255_s16 }
  0x22   : > { %v277_v33 = vadd.f32 %v261_v27, %v209_v26  ;;  %v1512_v37 = vld [vmem:[%s1474_s10 + $0x61] sm:$0xff]  ;;  %1104 = vmatpush3.msra.mxu0 %v673_v16  ;;  %1170 = vmatpush3.msra.mxu1 %v673_v16  ;;  %v217_v42 = vmul.f32 %v1467_v12, %v1509_v36  ;;  %v376_v54 = vmul.f32 %v1530_v44, %v1478_v18  ;;  %v1560_v59 = vld [vmem:[%s1474_s10 + $0x79] sm:$0xff]  ;;  %v242_v60 = vld [vmem:[%s1474_s10 + $0x9] sm:$0xff] }
  0x23   : > { %v1515_v38 = vld [vmem:[%s1474_s10 + $0x62] sm:$0xff]  ;;  %v269_v43 = vmul.f32 %v1469_v13, %v1512_v37  ;;  %1105 = vmatprep.subr.mxu0 %v672_v30  ;;  %1155 = vmatprep.subr.mxu1 %v672_v30  ;;  %v294_v61 = vld [vmem:[%s1474_s10 + $0xa] sm:$0xff]  ;;  %v579_v63 = vmul.f32 %v1543_v50, %v1523_v41  ;;  %v428_v1 = vmul.f32 %v1560_v59, %v1483_v23  ;;  %v1572_v2 = vld [vmem:[%s1474_s10 + $0x7a] sm:$0xff]  ;;  %p1257_p0 = pnand %p1256_p13, %p1423_p3  ;;  %p1264_p5 = por %p1263_p4, %p1262_p2 }
  0x24   : > { %v329_v46 = vadd.f32 %v313_v28, %v277_v33  ;;  %1106 = vmatpush3.msra.mxu0 %v672_v30  ;;  %1171 = vmatpush3.msra.mxu1 %v672_v30  ;;  %v321_v53 = vmul.f32 %v1476_v17, %v1515_v38  ;;  %v480_v4 = vmul.f32 %v1572_v2, %v1485_v24  ;;  %v1578_v6 = vld [vmem:[%s1474_s10 + $0x20] sm:$0xff]  ;;  %v1584_v9 = vld [vmem:[%s1474_s10 + $0x90] sm:$0xff]  ;;  %v1607_v28 = vld [vmem:[%s1474_s10 + $0x68] sm:$0xff] }
  0x25   : > { %v285_v52 = vadd.f32 %v269_v43, %v217_v42  ;;  %1107 = vmatprep.subr.mxu0 %v671_v31  ;;  %1156 = vmatprep.subr.mxu1 %v671_v31  ;;  %v210_v5 = vmul.f32 %v1467_v12, %v190_v55  ;;  %v1587_v10 = vld [vmem:[%s1474_s10 + $0x91] sm:$0xff]  ;;  %v262_v11 = vmul.f32 %v1469_v13, %v242_v60  ;;  %v1604_v27 = vld [vmem:[%s1474_s10 + $0x21] sm:$0xff]  ;;  %v1610_v30 = vld [vmem:[%s1474_s10 + $0x69] sm:$0xff]  ;;  %p1258_p1 = pneg %p1257_p0 }
  0x26   : > { %v384_v56 = vadd.f32 %v368_v34, %v329_v46  ;;  %1108 = vmatpush3.msra.mxu0 %v671_v31  ;;  %1172 = vmatpush3.msra.mxu1 %v671_v31  ;;  %v314_v14 = vmul.f32 %v1476_v17, %v294_v61  ;;  %v535_v19 = vmul.f32 %v1584_v9, %v1506_v35  ;;  %v1599_v21 = vld [vmem:[%s1474_s10 + $0x92] sm:$0xff]  ;;  %v1617_v42 = vld [vmem:[%s1474_s10 + $0x22] sm:$0xff]  ;;  %v1620_v43 = vld [vmem:[%s1474_s10 + $0x6a] sm:$0xff] }
  0x27   : > { %v337_v0 = vadd.f32 %v321_v53, %v285_v52  ;;  %1109 = vmatprep.subr.mxu0 %v670_v45  ;;  %1157 = vmatprep.subr.mxu1 %v670_v45  ;;  %v587_v20 = vmul.f32 %v1587_v10, %v1523_v41  ;;  %v278_v25 = vadd.f32 %v262_v11, %v210_v5  ;;  %v1628_v52 = vld [vmem:[%s1474_s10 + $0x80] sm:$0xff]  ;;  %v1638_v61 = vld [vmem:[%s1474_s10 + $0x38] sm:$0xff]  ;;  %p1265_p6 = pnand %p1264_p5, %p1258_p1 }
  0x28   : > { %v436_v3 = vadd.f32 %v420_v47, %v384_v56  ;;  %1110 = vmatpush3.msra.mxu0 %v670_v45  ;;  %1173 = vmatpush3.msra.mxu1 %v670_v45  ;;  %v369_v26 = vmul.f32 %v1578_v6, %v1478_v18  ;;  %v639_v33 = vmul.f32 %v1502_v32, %v1599_v21  ;;  %v666_v45 = vld [vmem:[%s2024_s2 + $0x18] sm:$0xff]  ;;  %v665_v56 = vld [vmem:[%s2024_s2 + $0x10] sm:$0xff] }
  0x29   : > { %v392_v8 = vadd.f32 %v376_v54, %v337_v0  ;;  %1111 = vmatprep.subr.mxu0 %v669_v62  ;;  %1158 = vmatprep.subr.mxu1 %v669_v62  ;;  %v421_v34 = vmul.f32 %v1604_v27, %v1483_v23  ;;  %v330_v47 = vadd.f32 %v314_v14, %v278_v25  ;;  %v1645_v0 = vld [vmem:[%s1474_s10 + $0x39] sm:$0xff]  ;;  %v1658_v14 = vld [vmem:[%s1474_s10 + $0x81] sm:$0xff] }
  0x2a   : > { %v488_v16 = vadd.f32 %v472_v48, %v436_v3  ;;  %1112 = vmatpush3.msra.mxu0 %v669_v62  ;;  %1174 = vmatpush3.msra.mxu1 %v669_v62  ;;  %v473_v48 = vmul.f32 %v1617_v42, %v1485_v24  ;;  %v218_v54 = vmul.f32 %v1467_v12, %v1607_v28  ;;  %v1655_v11 = vld [vmem:[%s1474_s10 + $0x3a] sm:$0xff] }
  0x2b   : > { %v444_v22 = vadd.f32 %v428_v1, %v392_v8  ;;  %1113 = vmatprep.subr.mxu0 %v668_v7  ;;  %1159 = vmatprep.subr.mxu1 %v668_v7  ;;  %v270_v55 = vmul.f32 %v1469_v13, %v1610_v30  ;;  %v385_v60 = vadd.f32 %v369_v26, %v330_v47 }
  0x2c   : > { %v543_v31 = vadd.f32 %v527_v57, %v488_v16  ;;  %1114 = vmatpush3.msra.mxu0 %v668_v7  ;;  %1175 = vmatpush3.msra.mxu1 %v668_v7  ;;  %v322_v62 = vmul.f32 %v1476_v17, %v1620_v43  ;;  %v377_v3 = vmul.f32 %v1628_v52, %v1478_v18 }
  0x2d   : > { %v496_v46 = vadd.f32 %v480_v4, %v444_v22  ;;  %1115 = vmatprep.subr.mxu0 %v667_v15  ;;  %1160 = vmatprep.subr.mxu1 %v667_v15  ;;  %v286_v1 = vadd.f32 %v270_v55, %v218_v54  ;;  %v664_v4 = vld [vmem:[%s2024_s2 + $0x8] sm:$0xff]  ;;  %v437_v7 = vadd.f32 %v421_v34, %v385_v60  ;;  %v1676_v54 = vld [vmem:[%s1474_s10 + $0x98] sm:$0xff] }
  0x2e   : > { %v595_v53 = vadd.f32 %v579_v63, %v543_v31  ;;  %1116 = vmatpush3.msra.mxu0 %v667_v15  ;;  %1176 = vmatpush3.msra.mxu1 %v667_v15  ;;  %v528_v63 = vmul.f32 %v1638_v61, %v1506_v35  ;;  %v580_v8 = vmul.f32 %v1645_v0, %v1523_v41  ;;  %v1665_v22 = vld [vmem:[%s1474_s10 + $0x82] sm:$0xff]  ;;  %v1685_v55 = vld [vmem:[%s1474_s10 + $0x99] sm:$0xff] }
  0x2f   : > { %v551_v57 = vadd.f32 %v535_v19, %v496_v46  ;;  %1117 = vmatprep.subr.mxu0 %v666_v45  ;;  %1161 = vmatprep.subr.mxu1 %v666_v45  ;;  %v632_v15 = vmul.f32 %v1502_v32, %v1655_v11  ;;  %v338_v16 = vadd.f32 %v322_v62, %v286_v1  ;;  %v1692_v62 = vld [vmem:[%s1474_s10 + $0x9a] sm:$0xff] }
  0x30   : > { %1118 = vmatpush3.msra.mxu0 %v666_v45  ;;  %1177 = vmatpush3.msra.mxu1 %v666_v45  ;;  %v429_v19 = vmul.f32 %v1658_v14, %v1483_v23  ;;  %2029 = vst [vmem:[#allocation5_spill] sm:$0xff] %v1665_v22  ;;  %v647_v25 = vadd.f32 %v1557_v58, %v595_v53 }
  0x31   : > { %v603_v5 = vadd.f32 %v587_v20, %v551_v57  ;;  %1119 = vmatprep.subr.mxu0 %v665_v56  ;;  %1162 = vmatprep.subr.mxu1 %v665_v56  ;;  %v663_v20 = vld [vmem:[%s2024_s2] sm:$0xff]  ;;  %v489_v26 = vadd.f32 %v473_v48, %v437_v7  ;;  %v481_v31 = vmul.f32 %v1665_v22, %v1485_v24  ;;  %v1701_v7 = vld [vmem:[%s1474_s10 + $0x48] sm:$0xff] }
  0x32   : > { %1120 = vmatpush3.msra.mxu0 %v665_v56  ;;  %1178 = vmatpush3.msra.mxu1 %v665_v56  ;;  %v393_v45 = vadd.f32 %v377_v3, %v338_v16  ;;  %v211_v46 = vmul.f32 %v1491_v29, %v1467_v12  ;;  %v263_v58 = vmul.f32 %v1518_v39, %v1469_v13 }
  0x33   : > { %1121 = vmatprep.subr.mxu0 %v664_v4  ;;  %1163 = vmatprep.subr.mxu1 %v664_v4  ;;  %v655_v34 = vadd.f32 %v639_v33, %v603_v5  ;;  %v544_v47 = vadd.f32 %v528_v63, %v489_v26  ;;  %v315_v48 = vmul.f32 %v1521_v40, %v1476_v17 }
  0x34   : > { %1122 = vmatpush3.msra.mxu0 %v664_v4  ;;  %1179 = vmatpush3.msra.mxu1 %v664_v4  ;;  %v445_v33 = vadd.f32 %v429_v19, %v393_v45  ;;  %v536_v53 = vmul.f32 %v1676_v54, %v1506_v35  ;;  %v279_v56 = vadd.f32 %v263_v58, %v211_v46 }
  0x35   : > { %1123 = vmatprep.subr.mxu0 %v663_v20  ;;  %1164 = vmatprep.subr.mxu1 %v663_v20  ;;  %v596_v29 = vadd.f32 %v580_v8, %v544_v47  ;;  %v370_v39 = vmul.f32 %v1540_v49, %v1478_v18  ;;  %v588_v57 = vmul.f32 %v1685_v55, %v1523_v41  ;;  %v1719_v47 = vld [vmem:[%s1474_s10 + $0x4a] sm:$0xff] }
  0x36   : > { %1124 = vmatpush3.msra.mxu0 %v663_v20  ;;  %1180 = vmatpush3.msra.mxu1 %v663_v20  ;;  %v497_v40 = vadd.f32 %v481_v31, %v445_v33  ;;  %v331_v63 = vadd.f32 %v315_v48, %v279_v56  ;;  %v422_v1 = vmul.f32 %v1543_v50, %v1483_v23 }
  0x37   : > { %1125 = vmatprep.mubr.f32.mxu0 %v647_v25  ;;  %1137 = vmatprep.mubr.f32.mxu1 %v655_v34  ;;  %v648_v60 = vadd.f32 %v632_v15, %v596_v29  ;;  %v219_v3 = vmul.f32 %v1530_v44, %v1467_v12  ;;  %v640_v5 = vmul.f32 %v1502_v32, %v1692_v62  ;;  %v1712_v25 = vld [vmem:[%s1474_s10 + $0x49] sm:$0xff] }
  0x38   : > { %v552_v4 = vadd.f32 %v536_v53, %v497_v40  ;;  %v271_v8 = vmul.f32 %v1560_v59, %v1469_v13  ;;  %v323_v15 = vmul.f32 %v1572_v2, %v1476_v17  ;;  %v386_v16 = vadd.f32 %v370_v39, %v331_v63 }
  0x39   : > { %1126 = vmatmul.mubr.f32.vlgmr.msra.gmra.mxu0 %v648_v60  ;;  %v474_v19 = vmul.f32 %v1546_v51, %v1485_v24  ;;  %v529_v20 = vmul.f32 %v1701_v7, %v1506_v35  ;;  %v581_v31 = vmul.f32 %v1712_v25, %v1523_v41  ;;  %v378_v45 = vmul.f32 %v1584_v9, %v1478_v18 }
  0x3a   : > { %v604_v26 = vadd.f32 %v588_v57, %v552_v4  ;;  %v287_v34 = vadd.f32 %v271_v8, %v219_v3  ;;  %v438_v46 = vadd.f32 %v422_v1, %v386_v16  ;;  %v212_v58 = vmul.f32 %v1578_v6, %v1467_v12  ;;  %v1734_v57 = vld [vmem:[%s1474_s10 + $0xa8] sm:$0xff] }
  0x3b   : > { %v264_v48 = vmul.f32 %v1604_v27, %v1469_v13  ;;  %v316_v33 = vmul.f32 %v1617_v42, %v1476_v17  ;;  %v633_v29 = vmul.f32 %v1502_v32, %v1719_v47  ;;  %v430_v39 = vmul.f32 %v1587_v10, %v1483_v23  ;;  %v1748_v8 = vld [vmem:[%s1474_s10 + $0xaa] sm:$0xff] }
  0x3c   : > { %v656_v53 = vadd.f32 %v640_v5, %v604_v26  ;;  %v339_v56 = vadd.f32 %v323_v15, %v287_v34  ;;  %v490_v40 = vadd.f32 %v474_v19, %v438_v46  ;;  %v482_v6 = vmul.f32 %v1599_v21, %v1485_v24  ;;  %v1745_v5 = vld [vmem:[%s1474_s10 + $0xa9] sm:$0xff] }
  0x3d   : > { %v280_v27 = vadd.f32 %v264_v48, %v212_v58  ;;  %v371_v42 = vmul.f32 %v1638_v61, %v1478_v18  ;;  %v537_v63 = vmul.f32 %v1734_v57, %v1506_v35  ;;  %v423_v1 = vmul.f32 %v1645_v0, %v1483_v23  ;;  %v1761_v48 = vld [vmem:[%s1474_s10 + $0x50] sm:$0xff] }
  0x3e   : > { %1138 = vmatmul.mubr.f32.vlgmr.msra.gmra.mxu1 %v656_v53  ;;  %v394_v60 = vadd.f32 %v378_v45, %v339_v56  ;;  %v220_v3 = vmul.f32 %v1628_v52, %v1467_v12  ;;  %v545_v4 = vadd.f32 %v529_v20, %v490_v40  ;;  %v272_v16 = vmul.f32 %v1658_v14, %v1469_v13 }
  0x3f   : > { %v332_v15 = vadd.f32 %v316_v33, %v280_v27  ;;  %v324_v19 = vmul.f32 %v1665_v22, %v1476_v17  ;;  %v589_v34 = vmul.f32 %v1745_v5, %v1523_v41  ;;  %v641_v45 = vmul.f32 %v1502_v32, %v1748_v8 }
  0x40   : > { %v446_v26 = vadd.f32 %v430_v39, %v394_v60  ;;  %v475_v20 = vmul.f32 %v1655_v11, %v1485_v24  ;;  %v597_v46 = vadd.f32 %v581_v31, %v545_v4  ;;  %v288_v33 = vadd.f32 %v272_v16, %v220_v3  ;;  %v1772_v60 = vld [vmem:[%s1474_s10 + $0x51] sm:$0xff] }
  0x41   : > { %v387_v58 = vadd.f32 %v371_v42, %v332_v15  ;;  %v379_v53 = vmul.f32 %v1676_v54, %v1478_v18  ;;  %v530_v39 = vmul.f32 %v1761_v48, %v1506_v35  ;;  %v431_v40 = vmul.f32 %v1685_v55, %v1483_v23 }
  0x42   : > { %v498_v56 = vadd.f32 %v482_v6, %v446_v26  ;;  %v213_v27 = vmul.f32 %v1540_v49, %v1467_v12  ;;  %v649_v31 = vadd.f32 %v633_v29, %v597_v46  ;;  %v340_v3 = vadd.f32 %v324_v19, %v288_v33  ;;  %v1783_v29 = vld [vmem:[%s1474_s10 + $0x52] sm:$0xff] }
  0x43   : > { %v439_v42 = vadd.f32 %v423_v1, %v387_v58  ;;  %v265_v4 = vmul.f32 %v1543_v50, %v1469_v13  ;;  %v582_v6 = vmul.f32 %v1772_v60, %v1523_v41  ;;  %v483_v16 = vmul.f32 %v1692_v62, %v1485_v24  ;;  %v1786_v19 = vld [vmem:[%s1474_s10 + $0xb0] sm:$0xff] }
  0x44   : > { %v553_v15 = vadd.f32 %v537_v63, %v498_v56  ;;  %v317_v26 = vmul.f32 %v1546_v51, %v1476_v17  ;;  %1128 = vmatprep.mubr.f32.mxu0 %v649_v31  ;;  %v395_v1 = vadd.f32 %v379_v53, %v340_v3  ;;  %v372_v50 = vmul.f32 %v1701_v7, %v1478_v18  ;;  %v1797_v53 = vld [vmem:[%s1474_s10 + $0xb1] sm:$0xff] }
  0x45   : > { %v491_v49 = vadd.f32 %v475_v20, %v439_v42  ;;  %v281_v46 = vadd.f32 %v265_v4, %v213_v27  ;;  %v634_v58 = vmul.f32 %v1502_v32, %v1783_v29  ;;  %v538_v33 = vmul.f32 %v1786_v19, %v1506_v35 }
  0x46   : > { %v605_v63 = vadd.f32 %v589_v34, %v553_v15  ;;  %v424_v51 = vmul.f32 %v1712_v25, %v1483_v23  ;;  %v447_v56 = vadd.f32 %v431_v40, %v395_v1  ;;  %v221_v27 = vmul.f32 %v1584_v9, %v1467_v12 }
  0x47   : > { %v546_v20 = vadd.f32 %v530_v39, %v491_v49  ;;  %v333_v31 = vadd.f32 %v317_v26, %v281_v46  ;;  %v590_v34 = vmul.f32 %v1797_v53, %v1523_v41  ;;  %v273_v3 = vmul.f32 %v1587_v10, %v1469_v13  ;;  %v1808_v39 = vld [vmem:[%s1474_s10 + $0xb2] sm:$0xff] }
  0x48   : > { %v657_v42 = vadd.f32 %v641_v45, %v605_v63  ;;  %v325_v4 = vmul.f32 %v1599_v21, %v1476_v17  ;;  %v499_v22 = vadd.f32 %v483_v16, %v447_v56  ;;  %v476_v26 = vmul.f32 %v1719_v47, %v1485_v24 }
  0x49   : > { %v598_v15 = vadd.f32 %v582_v6, %v546_v20  ;;  %v388_v40 = vadd.f32 %v372_v50, %v333_v31  ;;  %v642_v9 = vmul.f32 %v1502_v32, %v1808_v39  ;;  %v531_v45 = vmul.f32 %v1506_v35, %v1509_v36 }
  0x4a   : > { %1140 = vmatprep.mubr.f32.mxu1 %v657_v42  ;;  %v289_v49 = vadd.f32 %v273_v3, %v221_v27  ;;  %v380_v10 = vmul.f32 %v1734_v57, %v1478_v18  ;;  %v554_v6 = vadd.f32 %v538_v33, %v499_v22  ;;  %v432_v1 = vmul.f32 %v1745_v5, %v1483_v23 }
  0x4b   : > { %v650_v21 = vadd.f32 %v634_v58, %v598_v15  ;;  %v440_v16 = vadd.f32 %v424_v51, %v388_v40  ;;  %v214_v50 = vmul.f32 %v1638_v61, %v1467_v12  ;;  %v266_v63 = vmul.f32 %v1645_v0, %v1469_v13  ;;  %v1016_v51 = vld [vmem:[%s1474_s10 + $0xc0] sm:$0xff] }
  0x4c   : > { %v341_v46 = vadd.f32 %v325_v4, %v289_v49  ;;  %v318_v20 = vmul.f32 %v1655_v11, %v1476_v17  ;;  %v606_v56 = vadd.f32 %v590_v34, %v554_v6  ;;  %v583_v22 = vmul.f32 %v1523_v41, %v1512_v37  ;;  %v1032_v15 = vld [vmem:[%s1474_s10 + $0xc1] sm:$0xff] }
  0x4d   : > { %1129 = vmatmul.mubr.f32.gmra.mxu0 %v650_v21  ;;  %v492_v31 = vadd.f32 %v476_v26, %v440_v16  ;;  %v635_v58 = vmul.f32 %v1502_v32, %v1515_v38  ;;  %v484_v61 = vmul.f32 %v1748_v8, %v1485_v24  ;;  %v282_v27 = vadd.f32 %v266_v63, %v214_v50  ;;  %v1048_v16 = vld [vmem:[%s1474_s10 + $0xc2] sm:$0xff] }
  0x4e   : > { %v396_v33 = vadd.f32 %v380_v10, %v341_v46  ;;  %v373_v0 = vmul.f32 %v1761_v48, %v1478_v18  ;;  %v658_v11 = vadd.f32 %v642_v9, %v606_v56  ;;  %v539_v34 = vmul.f32 %v1016_v51, %v1506_v35 }
  0x4f   : > { %v547_v42 = vadd.f32 %v531_v45, %v492_v31  ;;  %v425_v3 = vmul.f32 %v1772_v60, %v1483_v23  ;;  %v334_v40 = vadd.f32 %v318_v20, %v282_v27  ;;  %v222_v26 = vmul.f32 %v1676_v54, %v1467_v12 }
  0x50   : > { %v448_v4 = vadd.f32 %v432_v1, %v396_v33  ;;  %v274_v49 = vmul.f32 %v1685_v55, %v1469_v13  ;;  %1141 = vmatmul.mubr.f32.gmra.mxu1 %v658_v11  ;;  %v591_v21 = vmul.f32 %v1032_v15, %v1523_v41  ;;  %v477_v9 = vmul.f32 %v1783_v29, %v1485_v24 }
  0x51   : > { %v599_v10 = vadd.f32 %v583_v22, %v547_v42  ;;  %v326_v45 = vmul.f32 %v1692_v62, %v1476_v17  ;;  %v389_v1 = vadd.f32 %v373_v0, %v334_v40  ;;  %v381_v54 = vmul.f32 %v1786_v19, %v1478_v18 }
  0x52   : > { %v500_v6 = vadd.f32 %v484_v61, %v448_v4  ;;  %v290_v46 = vadd.f32 %v274_v49, %v222_v26  ;;  %v643_v55 = vmul.f32 %v1502_v32, %v1048_v16  ;;  %v532_v63 = vmul.f32 %v1506_v35, %v1607_v28 }
  0x53   : > { %v651_v50 = vadd.f32 %v635_v58, %v599_v10  ;;  %v433_v20 = vmul.f32 %v1797_v53, %v1483_v23  ;;  %v441_v62 = vadd.f32 %v425_v3, %v389_v1  ;;  %v215_v22 = vmul.f32 %v1701_v7, %v1467_v12  ;;  %v1033_v3 = vld [vmem:[%s1474_s10 + $0xc9] sm:$0xff] }
  0x54   : > { %v555_v56 = vadd.f32 %v539_v34, %v500_v6  ;;  %v342_v31 = vadd.f32 %v326_v45, %v290_v46  ;;  %v584_v58 = vmul.f32 %v1523_v41, %v1610_v30  ;;  %v636_v33 = vmul.f32 %v1502_v32, %v1620_v43  ;;  %v1017_v34 = vld [vmem:[%s1474_s10 + $0xc8] sm:$0xff] }
  0x55   : > { %1131 = vmatprep.mubr.f32.mxu0 %v651_v50  ;;  %v267_v61 = vmul.f32 %v1712_v25, %v1469_v13  ;;  %v319_v27 = vmul.f32 %v1719_v47, %v1476_v17  ;;  %v493_v11 = vadd.f32 %v477_v9, %v441_v62  ;;  %v485_v7 = vmul.f32 %v1808_v39, %v1485_v24 }
  0x56   : > { %v607_v0 = vadd.f32 %v591_v21, %v555_v56  ;;  %v397_v42 = vadd.f32 %v381_v54, %v342_v31  ;;  %v540_v4 = vmul.f32 %v1017_v34, %v1506_v35  ;;  %v592_v40 = vmul.f32 %v1033_v3, %v1523_v41  ;;  %v1877_v21 = vld [vmem:[%s1474_s10 + $0xca] sm:$0xff] }
  0x57   : > { %v283_v26 = vadd.f32 %v267_v61, %v215_v22  ;;  %v374_v25 = vmul.f32 %v1478_v18, %v1509_v36  ;;  %v548_v10 = vadd.f32 %v532_v63, %v493_v11  ;;  %v223_v47 = vmul.f32 %v1734_v57, %v1467_v12 }
  0x58   : > { %v659_v49 = vadd.f32 %v643_v55, %v607_v0  ;;  %v449_v45 = vadd.f32 %v433_v20, %v397_v42  ;;  %v426_v6 = vmul.f32 %v1483_v23, %v1512_v37  ;;  %v275_v1 = vmul.f32 %v1745_v5, %v1469_v13  ;;  %v1034_v0 = vld [vmem:[%s1474_s10 + $0xd9] sm:$0xff] }
  0x59   : > { %v335_v9 = vadd.f32 %v319_v27, %v283_v26  ;;  %v327_v46 = vmul.f32 %v1748_v8, %v1476_v17  ;;  %v600_v36 = vadd.f32 %v584_v58, %v548_v10  ;;  %v644_v50 = vmul.f32 %v1502_v32, %v1877_v21  ;;  %v1018_v58 = vld [vmem:[%s1474_s10 + $0xd8] sm:$0xff] }
  0x5a   : > { %1143 = vmatprep.mubr.f32.mxu1 %v659_v49  ;;  %v501_v54 = vadd.f32 %v485_v7, %v449_v45  ;;  %v478_v57 = vmul.f32 %v1485_v24, %v1515_v38  ;;  %v533_v37 = vmul.f32 %v1530_v44, %v1506_v35  ;;  %v291_v63 = vadd.f32 %v275_v1, %v223_v47 }
  0x5b   : > { %v390_v55 = vadd.f32 %v374_v25, %v335_v9  ;;  %v382_v5 = vmul.f32 %v1016_v51, %v1478_v18  ;;  %v652_v20 = vadd.f32 %v636_v33, %v600_v36  ;;  %v434_v56 = vmul.f32 %v1032_v15, %v1483_v23 }
  0x5c   : > { %v556_v8 = vadd.f32 %v540_v4, %v501_v54  ;;  %v216_v62 = vmul.f32 %v1761_v48, %v1467_v12  ;;  %v343_v22 = vadd.f32 %v327_v46, %v291_v63  ;;  %v268_v38 = vmul.f32 %v1772_v60, %v1469_v13  ;;  %v2030_v54 = vld [vmem:[#allocation5_spill] sm:$0xff] }
  0x5d   : > { %v442_v31 = vadd.f32 %v426_v6, %v390_v55  ;;  %v320_v44 = vmul.f32 %v1783_v29, %v1476_v17  ;;  %1132 = vmatmul.mubr.f32.gmra.mxu0 %v652_v20  ;;  %v585_v33 = vmul.f32 %v1560_v59, %v1523_v41  ;;  %v637_v15 = vmul.f32 %v1502_v32, %v1572_v2 }
  0x5e   : > { %v608_v51 = vadd.f32 %v592_v40, %v556_v8  ;;  %v486_v48 = vmul.f32 %v1048_v16, %v1485_v24  ;;  %v398_v27 = vadd.f32 %v382_v5, %v343_v22  ;;  %v284_v11 = vadd.f32 %v268_v38, %v216_v62  ;;  %v1050_v40 = vld [vmem:[%s1474_s10 + $0xda] sm:$0xff] }
  0x5f   : > { %v494_v61 = vadd.f32 %v478_v57, %v442_v31  ;;  %v375_v60 = vmul.f32 %v1478_v18, %v1607_v28  ;;  %v541_v29 = vmul.f32 %v1018_v58, %v1506_v35  ;;  %v427_v7 = vmul.f32 %v1483_v23, %v1610_v30 }
  0x60   : > { %v660_v42 = vadd.f32 %v644_v50, %v608_v51  ;;  %v224_v59 = vmul.f32 %v1786_v19, %v1467_v12  ;;  %v450_v2 = vadd.f32 %v434_v56, %v398_v27  ;;  %v336_v16 = vadd.f32 %v320_v44, %v284_v11 }
  0x61   : > { %v549_v4 = vadd.f32 %v533_v37, %v494_v61  ;;  %v276_v26 = vmul.f32 %v1797_v53, %v1469_v13  ;;  %v593_v25 = vmul.f32 %v1034_v0, %v1523_v41  ;;  %v479_v28 = vmul.f32 %v1485_v24, %v1620_v43 }
  0x62   : > { %1144 = vmatmul.mubr.f32.gmra.mxu1 %v660_v42  ;;  %v328_v30 = vmul.f32 %v1808_v39, %v1476_v17  ;;  %v383_v49 = vmul.f32 %v1017_v34, %v1478_v18  ;;  %v502_v19 = vadd.f32 %v486_v48, %v450_v2  ;;  %v391_v10 = vadd.f32 %v375_v60, %v336_v16  ;;  %v1019_v18 = vld [vmem:[%s1474_s10 + $0xe0] sm:$0xff] }
  0x63   : > { %v601_v12 = vadd.f32 %v585_v33, %v549_v4  ;;  %v292_v45 = vadd.f32 %v276_v26, %v224_v59  ;;  %v645_v47 = vmul.f32 %v1502_v32, %v1050_v40  ;;  %v534_v13 = vmul.f32 %v1628_v52, %v1506_v35 }
  0x64   : > { %v435_v53 = vmul.f32 %v1033_v3, %v1483_v23  ;;  %v557_v6 = vadd.f32 %v541_v29, %v502_v19  ;;  %v443_v43 = vadd.f32 %v427_v7, %v391_v10  ;;  %v586_v17 = vmul.f32 %v1658_v14, %v1523_v41  ;;  %v1035_v23 = vld [vmem:[%s1474_s10 + $0xe1] sm:$0xff] }
  0x65   : > { %v653_v9 = vadd.f32 %v637_v15, %v601_v12  ;;  %v344_v1 = vadd.f32 %v328_v30, %v292_v45  ;;  %v487_v36 = vmul.f32 %v1877_v21, %v1485_v24  ;;  %v638_v52 = vmul.f32 %v1502_v32, %v2030_v54  ;;  %v1051_v14 = vld [vmem:[%s1474_s10 + $0xe2] sm:$0xff]  ;;  %s1060_s10 = sshll.u32 %s1331_s15, 4  ;;  %s1971_s15 = scalar_lea.sflag [#allocation3], %s175_s6 }
  0x66   : > { %v609_v39 = vadd.f32 %v593_v25, %v557_v6  ;;  %v495_v34 = vadd.f32 %v479_v28, %v443_v43  ;;  %v542_v55 = vmul.f32 %v1019_v18, %v1506_v35  ;;  %v594_v5 = vmul.f32 %v1035_v23, %v1523_v41  ;;  %s854_s11 = sadd.s32 %s1060_s10, %s1056_s9 }
  0x67   : > { %1134 = vmatprep.mubr.f32.mxu0 %v653_v9  ;;  %v399_v46 = vadd.f32 %v383_v49, %v344_v1  ;;  %v646_v24 = vmul.f32 %v1502_v32, %v1051_v14  ;;  %s1057_s20 = sshll.u32 %s854_s11, 7 }
  0x68   : > { %v661_v3 = vadd.f32 %v645_v47, %v609_v39  ;;  %v550_v50 = vadd.f32 %v534_v13, %v495_v34  ;;  %s1963_s28 = scalar_lea.hbm %s2025_s3, %s1057_s20 }
  0x69   : > { %v451_v57 = vadd.f32 %v435_v53, %v399_v46 }
  0x6a   : > { %1146 = vmatprep.mubr.f32.mxu1 %v661_v3  ;;  %v602_v37 = vadd.f32 %v586_v17, %v550_v50 }
  0x6b   : > { %v503_v63 = vadd.f32 %v487_v36, %v451_v57 }
  0x6c   : > { %v654_v20 = vadd.f32 %v638_v52, %v602_v37 }
  0x6d   : > { %v558_v8 = vadd.f32 %v542_v55, %v503_v63 }
  0x6e   : > { %1135 = vmatmul.mubr.f32.gmra.mxu0 %v654_v20 }
  0x6f   : > { %v610_v21 = vadd.f32 %v594_v5, %v558_v8 }
  0x71   : > { %v662_v56 = vadd.f32 %v646_v24, %v610_v21 }
  0x73   : > { %1147 = vmatmul.mubr.f32.gmra.mxu1 %v662_v56 }
  0xf9   : > { %v1127_v62 = vpop.f32.mrf.mxu0 }
  0xfa   : > { %825 = vst [vmem:[%s1941_s8 + $0x8] sm:$0xff] %v1127_v62 }
  0xfb   : > { %v745_v32 = vpop.f32.mrf.mxu0 }
  0xfc   : > { %824 = vst [vmem:[%s1941_s8] sm:$0xff] %v745_v32 }
  0xfe   : > { %v1139_v35 = vpop.f32.mrf.mxu1 }
  0xff   : > { %833 = vst [vmem:[%s1941_s8 + $0x48] sm:$0xff] %v1139_v35 }
 0x100   : > { %v785_v41 = vpop.f32.mrf.mxu1 }
 0x101   : > { %832 = vst [vmem:[%s1941_s8 + $0x40] sm:$0xff] %v785_v41 }
 0x10d   : > { %v1130_v31 = vpop.f32.mrf.mxu0 }
 0x10e   : > { %827 = vst [vmem:[%s1941_s8 + $0x18] sm:$0xff] %v1130_v31 }
 0x10f   : > { %v755_v22 = vpop.f32.mrf.mxu0 }
 0x110   : > { %826 = vst [vmem:[%s1941_s8 + $0x10] sm:$0xff] %v755_v22  ;;  %v1142_v58 = vpop.f32.mrf.mxu1 }
 0x111   : > { %835 = vst [vmem:[%s1941_s8 + $0x58] sm:$0xff] %v1142_v58 }
 0x112   : > { %v795_v38 = vpop.f32.mrf.mxu1 }
 0x113   : > { %834 = vst [vmem:[%s1941_s8 + $0x50] sm:$0xff] %v795_v38 }
 0x11d   : > { %v1133_v44 = vpop.f32.mrf.mxu0 }
 0x11e   : > { %829 = vst [vmem:[%s1941_s8 + $0x28] sm:$0xff] %v1133_v44 }
 0x11f   : > { %v765_v51 = vpop.f32.mrf.mxu0 }
 0x120   : > { %828 = vst [vmem:[%s1941_s8 + $0x20] sm:$0xff] %v765_v51 }
 0x122   : > { %v1145_v33 = vpop.f32.mrf.mxu1 }
 0x123   : > { %837 = vst [vmem:[%s1941_s8 + $0x68] sm:$0xff] %v1145_v33 }
 0x124   : > { %v805_v15 = vpop.f32.mrf.mxu1 }
 0x125   : > { %836 = vst [vmem:[%s1941_s8 + $0x60] sm:$0xff] %v805_v15 }
 0x12e   : > { %v1136_v48 = vpop.f32.mrf.mxu0 }
 0x12f   : > { %831 = vst [vmem:[%s1941_s8 + $0x38] sm:$0xff] %v1136_v48 }
 0x130   : > { %v775_v61 = vpop.f32.mrf.mxu0 }
 0x131   : > { %830 = vst [vmem:[%s1941_s8 + $0x30] sm:$0xff] %v775_v61 }
 0x133   : > { %v1148_v27 = vpop.f32.mrf.mxu1 }
 0x134   : > { %839 = vst [vmem:[%s1941_s8 + $0x78] sm:$0xff] %v1148_v27 }
 0x135   : > { %v815_v0 = vpop.f32.mrf.mxu1 }
 0x136   : > { %838 = vst [vmem:[%s1941_s8 + $0x70] sm:$0xff] %v815_v0 }
 0x137   : > { %1268 = shalt.err (!%p1265_p6)
}
 0x138   : > { %s1269_s6 = scalar_lea.hbm %s1963_s28, 2048  ;;  %s1273_s10 = scalar_lea.hbm %s2025_s3, 8192 }
 0x139   : > { %p1270_p7 = scmp.ne.s32.totalorder %s1963_s28, %s1269_s6  ;;  %p1274_p11 = scmp.lt.s32.totalorder %s1963_s28, %s2025_s3 }
 0x13a   : > { %p1275_p12 = scmp.lt.s32.totalorder %s1273_s10, %s1269_s6 }
 0x13b   : > { %p1271_p9 = pnand %p1270_p7, %p1423_p3 }
 0x13c   : > { %p1276_p13 = por %p1275_p12, %p1274_p11 }
 0x13d   : > { %p1272_p10 = pneg %p1271_p9 }
 0x13f   : > { %p1277_p0 = pnand %p1276_p13, %p1272_p10 }
 0x141   : > { %1280 = shalt.err (!%p1277_p0)
}
 0x142   : > { %s1350_s20 = smov 128   ;;  %s1351_s24 = smov 8  }
 0x143   : > { %1182 = dma.vmem_to_hbm [thread:$0]  (%p1423_p3), %s1965_s21, 2048, %s1963_s28, %s1971_s15, %s1350_s20, %s1350_s20, %s1351_s24  }
 0x144 PF: > { %p1188_p1 = scmp.ge.s32.totalorder %s1347_s19, 2  ;;  %s872_s27 = sand.u32 1, %s1319_s12  }
 0x145   : > { %s873_s16 = scalar_lea.sflag [#allocation3], %s872_s27 }
 0x146   : > { %p1185_p2 = pnand %p1188_p1, %p1432_p8 }
 0x148   : > { %p1186_p4 = pneg %p1185_p2 }
 0x14a   : > { %1314 = dma.done.wait (%p1186_p4), %s873_s16, 2048  }
 0x14b   : > { %1316 = vsyncadd (%p1186_p4), %s873_s16, 4294965248  ;;  %s16_s19 = sadd.s32 1, %s1347_s19   ;;  %s2031_s12 = smov %s1323_s13 }
 0x14c   : > { %p13_p5 = scmp.ge.s32.totalorder %s16_s19, 6   ;;  %s2032_s13 = smov %s1327_s14 }
 0x14d   : > { %s2033_s14 = smov %s1441_s30  ;;  %s2034_s15 = smov %s1339_s17 }
 0x14e   : > { %s2035_s16 = smov %s1343_s18  ;;  %s2036_s17 = smov %s2039_s22 }
 0x14f   : > { %s2037_s18 = smov %s2043_s23  ;;  %15 = sbr.rel (!%p13_p5) target bundleno = 5 (0x5), region = 70 }
 0x154   :  { %878 = vsyncpa [#allocation3], 1 }
 0x155   :  { %880 = vsyncpa [#allocation3 + $0x1], 1 }

</bundles_post_ra>
